<compile_context>
chip_gen: v5e
topology: v5e:2x2
jax: 0.10.0
libtpu: 0.0.40
codegen_flags: <defaults>
</compile_context>

<pallas_src>
import jax
import jax.numpy as jnp
from jax.experimental import pallas as pl
from jax.experimental.pallas import tpu as pltpu


_SUBLANE = 32                   # int8 sublane-packing granularity for row tiles
_TARGET_TILE_ELEMS = 1 << 20    # ~4 MiB of f32 per input tile (1024 x 1024)
_LANE_CANDIDATES = (1024, 512, 256, 128)


def _round_up(a, b):
    return ((a + b - 1) // b) * b


def _mel_scale_kernel(x_ref, o_ref):
    # Elementwise hot path: VPU (mul/add) + EUP (tanh). HBM is the binding
    # resource, so the body is intentionally left simple.
    x = x_ref[...].astype(jnp.float32)
    y = jnp.tanh(x * x * 0.001 + 1.0) * 2595.0
    # torch CharTensor cast: truncate toward zero, then wrap mod 256.
    # TODO(synk): torch's float->int8 cast is implementation-defined for
    # out-of-range values; explicit mod-256 wrap matches the common behavior.
    y_i32 = y.astype(jnp.int32)                         # truncating f32 -> i32
    o_ref[...] = (((y_i32 + 128) & 0xFF) - 128).astype(jnp.int8)


def _run_slab(flat, lane):
    """flat: 1-D array whose length is a multiple of `lane`."""
    total = flat.shape[0]
    rows = total // lane
    slab = jnp.reshape(flat, (rows, lane))              # no padding, no copy of note

    target_rows = max(_SUBLANE, (_TARGET_TILE_ELEMS // lane) // _SUBLANE * _SUBLANE)
    if rows <= _SUBLANE:
        row_tile = rows                                  # block == full row extent (allowed)
    else:
        # >= 2 grid steps so ("parallel",) can shard across v7x's two TensorCores.
        row_tile = min(target_rows, _round_up(pl.cdiv(rows, 2), _SUBLANE))

    grid = (pl.cdiv(rows, row_tile),)                    # ragged last tile -> boundary masked
    itemsize = jnp.dtype(flat.dtype).itemsize

    out = pl.pallas_call(
        _mel_scale_kernel,
        out_shape=jax.ShapeDtypeStruct((rows, lane), jnp.int8),
        grid=grid,
        in_specs=[pl.BlockSpec((row_tile, lane), lambda i: (i, 0))],
        out_specs=pl.BlockSpec((row_tile, lane), lambda i: (i, 0)),
        compiler_params=pltpu.CompilerParams(
            dimension_semantics=("parallel",)),
        cost_estimate=pl.CostEstimate(
            flops=4 * total,                             # 3 muls + 1 add per element
            transcendentals=total,                       # 1 tanh per element
            bytes_accessed=(itemsize + 1) * total),      # native-dtype read + int8 write
    )(slab)
    return jnp.reshape(out, (total,))


def _run_tail(flat_tail):
    """flat_tail: 1-D array with fewer than 128 elements (rare ragged remainder)."""
    n = flat_tail.shape[0]
    out = pl.pallas_call(                                # single whole-array block
        _mel_scale_kernel,
        out_shape=jax.ShapeDtypeStruct((1, n), jnp.int8),
    )(jnp.reshape(flat_tail, (1, n)))
    return jnp.reshape(out, (n,))


def mel_scale(x):
    """x: any-rank array (B, ...). Returns int8 array of shape (B, prod(rest))."""
    B = x.shape[0]
    N = 1
    for d in x.shape[1:]:
        N *= d
    total = B * N

    flat = jnp.reshape(x, (total,))                      # native dtype; cast happens in-kernel

    lane = next((c for c in _LANE_CANDIDATES if total % c == 0), None)
    if lane is not None:
        out_flat = _run_slab(flat, lane)
    else:
        # Rare non-multiple-of-128 size: lane-aligned main slab + tiny tail kernel
        # (avoids a full-array jnp.pad and a post-kernel slice copy).
        main = (total // 128) * 128
        parts = []
        if main:
            parts.append(_run_slab(flat[:main], 128))
        parts.append(_run_tail(flat[main:]))
        out_flat = jnp.concatenate(parts) if len(parts) > 1 else parts[0]

    return jnp.reshape(out_flat, (B, N))


if __name__ == "__main__":
    key = jax.random.PRNGKey(0)
    # NCHW-style input: B=2, C=4, H=W=16  ->  flattened N=1024
    x = jax.random.normal(key, (2, 4, 16, 16), dtype=jnp.float32)

    y = jax.block_until_ready(mel_scale(x))

    # Pure-JAX reference of the same semantics.
    xf = jnp.reshape(x, (2, -1)).astype(jnp.float32)
    f = jnp.tanh(xf * xf * 0.001 + 1.0) * 2595.0
    r_i32 = f.astype(jnp.int32)
    ref = (((r_i32 + 128) & 0xFF) - 128).astype(jnp.int8)

    assert y.shape == (2, 1024) and y.dtype == jnp.int8
    # Wrap-aware comparison; allow <=1 LSB for truncation flips at integer
    # boundaries caused by tiny tanh-implementation differences (kernel vs XLA).
    d = jnp.abs(y.astype(jnp.int32) - ref.astype(jnp.int32))
    d = jnp.minimum(d, 256 - d)
    assert bool(jnp.all(d <= 1)), f"max wrap-aware diff {int(jnp.max(d))}"
    print("KERNEL_OK")
</pallas_src>

<mosaic_0001>
module attributes {stable_mosaic.version = 11 : i64} {
  func.func @_mel_scale_kernel(%arg0: i32, %arg1: memref<2x1024xf32, #tpu.memory_space<vmem>>, %arg2: memref<2x1024xi8, #tpu.memory_space<vmem>>) attributes {dimension_semantics = [#tpu.dimension_semantics<parallel>], iteration_bounds = array<i64: 1>, scalar_prefetch = 0 : i64, scratch_operands = 0 : i64, tpu.core_type = #tpu.core_type<tc>, window_params = [{transform_indices = @transform_0, window_bounds = array<i64: 2, 1024>}, {transform_indices = @transform_1, window_bounds = array<i64: 2, 1024>}]} {
    %c0 = arith.constant 0 : index
    %c0_0 = arith.constant 0 : index
    %0 = vector.load %arg1[%c0, %c0_0] : memref<2x1024xf32, #tpu.memory_space<vmem>>, vector<2x1024xf32>
    %1 = arith.mulf %0, %0 : vector<2x1024xf32>
    %cst = arith.constant 1.000000e-03 : f32
    %2 = vector.broadcast %cst : f32 to vector<2x1024xf32>
    %3 = arith.mulf %1, %2 : vector<2x1024xf32>
    %cst_1 = arith.constant 1.000000e+00 : f32
    %4 = vector.broadcast %cst_1 : f32 to vector<2x1024xf32>
    %5 = arith.addf %3, %4 : vector<2x1024xf32>
    %6 = math.tanh %5 : vector<2x1024xf32>
    %cst_2 = arith.constant 2.595000e+03 : f32
    %7 = vector.broadcast %cst_2 : f32 to vector<2x1024xf32>
    %8 = arith.mulf %6, %7 : vector<2x1024xf32>
    %9 = arith.fptosi %8 : vector<2x1024xf32> to vector<2x1024xi32>
    %c128_i32 = arith.constant 128 : i32
    %10 = vector.broadcast %c128_i32 : i32 to vector<2x1024xi32>
    %11 = arith.addi %9, %10 : vector<2x1024xi32>
    %c255_i32 = arith.constant 255 : i32
    %12 = vector.broadcast %c255_i32 : i32 to vector<2x1024xi32>
    %13 = arith.andi %11, %12 : vector<2x1024xi32>
    %c128_i32_3 = arith.constant 128 : i32
    %14 = vector.broadcast %c128_i32_3 : i32 to vector<2x1024xi32>
    %15 = arith.subi %13, %14 : vector<2x1024xi32>
    %16 = arith.trunci %15 : vector<2x1024xi32> to vector<2x1024xi8>
    %c0_4 = arith.constant 0 : index
    %c0_5 = arith.constant 0 : index
    %17 = vector.load %arg2[%c0_4, %c0_5] : memref<2x1024xi8, #tpu.memory_space<vmem>>, vector<2x1024xi8>
    tpu.vector_store %arg2[%c0_4, %c0_5], %16 {strides = array<i32>} : memref<2x1024xi8, #tpu.memory_space<vmem>>, vector<2x1024xi8>,
    return
  }
  func.func @transform_0(%arg0: i32) -> (i32, i32) {
    %c0_i32 = arith.constant 0 : i32
    %c0_i32_0 = arith.constant 0 : i32
    return %arg0, %c0_i32 : i32, i32
  }
  func.func @transform_1(%arg0: i32) -> (i32, i32) {
    %c0_i32 = arith.constant 0 : i32
    %c0_i32_0 = arith.constant 0 : i32
    return %arg0, %c0_i32 : i32, i32
  }
}

</mosaic_0001>

<bundles_post_ra>
// kernel: tpu_custom_call.1
= control target key start
LH: loop header
LB: loop body
LE: loop exit
PB: predicated region body
PF: predicated region fallthrough
CT: control target
= control target key end

     0   :  { %6 = vsyncpa [#allocation3], 0  ;;  %s292_s0 = inlined_call_operand.hbm [shape: f32[2,1024], index: 0, kind: input, shape index: {}]   ;;  %s293_s1 = inlined_call_operand.hbm [shape: s8[2,1024], index: 1, kind: output, shape index: {}]  }
   0x1   :  { %7 = vsyncpa [#allocation4], 0  ;;  %s13_s8 = sshll.u32 %s292_s0, 4  ;;  %s221_s9 = smov [#allocation2]   ;;  %s14_s8 = int_to_ptr.hbm [resolvable:$true] %s13_s8 }
   0x2   :  { %s15_s10 = sshll.u32 %s221_s9, 4  ;;  %s16_s10 = int_to_ptr.vmem [resolvable:$true] %s15_s10 }
   0x3   :  { %18 = dma.hbm_to_vmem [thread:$0]  %s14_s8, 256, %s16_s10, [#allocation3]  }
   0x4   :  { %217 = dma.done.wait [#allocation3], 256  }
   0x5   :  { %218 = vsyncadd [#allocation3], 4294967040  ;;  %v23_v0 = vld [vmem:[#allocation2] sm:$0xff]  ;;  %v24_v1 = vld [vmem:[#allocation2 + $0x8] sm:$0xff]  ;;  %vm295_vm0 = vcmask 1040384   ;;  %vm103_vm2 = vcmask 1041409  }
   0x6   :  { %v25_v2 = vmul.f32 %v23_v0, %v23_v0  ;;  %v26_v3 = vmul.f32 %v24_v1, %v24_v1  ;;  %vm101_vm1 = vsmask.f32 256  ;;  %vm104_vm3 = vsmask.f32 1280  ;;  %s222_s0 = smov [#allocation5]   ;;  %s141_s14 = sshll.u32 %s293_s1, 4  ;;  %s142_s14 = int_to_ptr.hbm [resolvable:$true] %s141_s14 }
   0x7   :  { %vm237_vm5 = vmand %vm295_vm0, %vm101_vm1  ;;  %vm294_vm8 = vcmask 1042434   ;;  %vm108_vm9 = vsmask.f32 2304  ;;  %vm111_vm12 = vcmask 1043459   ;;  %vm112_vm13 = vsmask.f32 3328 }
   0x8   :  { %v27_v4 = vmul.f32 0.001, %v25_v2  ;;  %v28_v5 = vmul.f32 0.001, %v26_v3  ;;  %vm241_vm7 = vmand %vm103_vm2, %vm104_vm3  ;;  %vm87_vm1 = vcmask 1044484   ;;  %s139_s11 = sshll.u32 %s222_s0, 4  ;;  %s140_s11 = int_to_ptr.vmem [resolvable:$true] %s139_s11 }
   0x9   :  { %vm106_vm10 = vmor %vm241_vm7, %vm237_vm5  ;;  %vm116_vm2 = vsmask.f32 4352  ;;  %vm119_vm5 = vcmask 1045509   ;;  %vm85_vm7 = vcmask 1041408  }
   0xa   :  { %v29_v6 = vadd.f32 1.0, %v27_v4  ;;  %v30_v7 = vadd.f32 1.0, %v28_v5  ;;  %vm109_vm11 = vmand %vm294_vm8, %vm108_vm9  ;;  %vm91_vm8 = vcmask 1046534   ;;  %v131_v4 = vld [vmem:[#allocation5] sm:$0xff] }
   0xb   :  { %vm110_vm14 = vmor %vm109_vm11, %vm106_vm10  ;;  %vm124_vm10 = vsmask.f32 6400  ;;  %vm127_vm11 = vcmask 1047559  }
   0xc   :  { %165 = vtanh.f32 %v29_v6  ;;  %vm113_vm15 = vmand %vm111_vm12, %vm112_vm13  ;;  %vm128_vm12 = vsmask.f32 7424 }
   0xd   :  { %167 = vtanh.f32 %v30_v7  ;;  %vm114_vm3 = vmor %vm113_vm15, %vm110_vm14 }
   0xe   :  { %vm125_vm14 = vmand %vm91_vm8, %vm124_vm10 }
  0x12   :  { %v166_v8 = vpop.eup %165 }
  0x13   :  { %v168_v9 = vpop.eup %167  ;;  %v33_v10 = vmul.f32 2595.0, %v166_v8 }
  0x14   :  { %v34_v11 = vmul.f32 2595.0, %v168_v9 }
  0x15   :  { %vm153_vm4 = vcmp.lt.s32.totalorder %v33_v10, 0  ;;  %v154_v12 = vceil.f32 %v33_v10  ;;  %v155_v13 = vfloor.f32 %v33_v10 }
  0x16   :  { %vm158_vm6 = vcmp.lt.s32.totalorder %v34_v11, 0  ;;  %v159_v15 = vceil.f32 %v34_v11  ;;  %v160_v16 = vfloor.f32 %v34_v11 }
  0x17   :  { %v156_v18 = vsel %vm153_vm4, %v154_v12, %v155_v13  ;;  %vm117_vm4 = vmand %vm87_vm1, %vm116_vm2  ;;  %vm306_vm2 = vcmask 1040384  }
  0x18   :  { %v157_v19 = vcvt.f32.s32 %v156_v18  ;;  %v161_v20 = vsel %vm158_vm6, %v159_v15, %v160_v16  ;;  %vm120_vm6 = vsmask.f32 5376  ;;  %vm251_vm9 = vmor %vm117_vm4, %vm114_vm3  ;;  %vm309_vm4 = vcmask 1042434  }
  0x19   :  { %v162_v21 = vcvt.f32.s32 %v161_v20  ;;  %vm255_vm0 = vmand %vm119_vm5, %vm120_vm6  ;;  %vm95_vm5 = vcmask 1045508  }
  0x1a   :  { %v37_v22 = vadd.s32 128, %v157_v19  ;;  %vm122_vm13 = vmor %vm255_vm0, %vm251_vm9  ;;  %vm97_vm0 = vcmask 1043456  }
  0x1b   :  { %v38_v23 = vadd.s32 128, %v162_v21  ;;  %vm270_vm15 = vmor %vm125_vm14, %vm122_vm13 }
  0x1c   :  { %v39_v24 = vand.u32 255, %v37_v22  ;;  %vm277_vm3 = vmand %vm127_vm11, %vm128_vm12 }
  0x1d   :  { %v40_v25 = vand.u32 255, %v38_v23  ;;  %vm130_vm6 = vmor %vm277_vm3, %vm270_vm15 }
  0x1e   :  { %v151_v26 = vadd.s32 4294967168, %v39_v24 }
  0x1f   :  { %v152_v27 = vadd.s32 4294967168, %v40_v25 }
  0x20   :  { %43 = vst [vmem:[#allocation1] ss:$4 sm:$0xff] %v151_v26 }
  0x21   :  { %45 = vst [vmem:[#allocation1 + $0x20] ss:$4 sm:$0xff] %v152_v27 }
  0x27   :  { %v46_v30 = vld.sshfl [vmem:[#allocation1] sm:$0xff pattern:$0x73625140]  ;;  %v47_v31 = vld.sshfl [vmem:[#allocation1 + $0x8] sm:$0xff pattern:$0x73625140] }
  0x28   :  { %v48_v32 = vld.sshfl [vmem:[#allocation1 + $0x10] sm:$0xff pattern:$0x73625140]  ;;  %v49_v33 = vld.sshfl [vmem:[#allocation1 + $0x18] sm:$0xff pattern:$0x73625140]  ;;  %v54_v34 = vpack.c.b16 %v46_v30, %v46_v30  ;;  %v56_v35 = vpack.c.b16 %v47_v31, %v47_v31 }
  0x29   :  { %v50_v36 = vld.sshfl [vmem:[#allocation1 + $0x20] sm:$0xff pattern:$0x73625140]  ;;  %v51_v37 = vld.sshfl [vmem:[#allocation1 + $0x28] sm:$0xff pattern:$0x73625140]  ;;  %v58_v38 = vpack.c.b16 %v48_v32, %v48_v32  ;;  %v60_v39 = vpack.c.b16 %v49_v33, %v49_v33 }
  0x2a   :  { %v52_v40 = vld.sshfl [vmem:[#allocation1 + $0x30] sm:$0xff pattern:$0x73625140]  ;;  %v53_v41 = vld.sshfl [vmem:[#allocation1 + $0x38] sm:$0xff pattern:$0x73625140]  ;;  %v57_v42 = vpack.c.b8 %v56_v35, %v56_v35  ;;  %v62_v43 = vpack.c.b16 %v50_v36, %v50_v36  ;;  %v64_v44 = vpack.c.b16 %v51_v37, %v51_v37  ;;  %v55_v49 = vpack.c.b8 %v54_v34, %v54_v34 }
  0x2b   :  { %v59_v45 = vpack.c.b8 %v58_v38, %v58_v38  ;;  %v61_v46 = vpack.c.b8 %v60_v39, %v60_v39  ;;  %v66_v47 = vpack.c.b16 %v52_v40, %v52_v40  ;;  %v68_v48 = vpack.c.b16 %v53_v41, %v53_v41 }
  0x2c   :  { %v63_v50 = vpack.c.b8 %v62_v43, %v62_v43  ;;  %v65_v51 = vpack.c.b8 %v64_v44, %v64_v44  ;;  %v70_v52 = vrot.slane %v57_v42, 7 }
  0x2d   :  { %v67_v53 = vpack.c.b8 %v66_v47, %v66_v47  ;;  %v69_v54 = vpack.c.b8 %v68_v48, %v68_v48  ;;  %v71_v55 = vrot.slane %v59_v45, 6  ;;  %v72_v56 = vrot.slane %v61_v46, 5 }
  0x2e   :  { %v73_v58 = vrot.slane %v63_v50, 4  ;;  %v74_v59 = vrot.slane %v65_v51, 3  ;;  %v80_v60 = vsel %vm306_vm2, %v55_v49, %v70_v52 }
  0x2f   :  { %v75_v62 = vrot.slane %v67_v53, 2  ;;  %v76_v63 = vrot.slane %v69_v54, 1  ;;  %v84_v0 = vsel %vm309_vm4, %v71_v55, %v72_v56 }
  0x30   :  { %v86_v1 = vsel %vm85_vm7, %v80_v60, %v84_v0  ;;  %v90_v2 = vsel %vm87_vm1, %v73_v58, %v74_v59 }
  0x31   :  { %v94_v3 = vsel %vm91_vm8, %v75_v62, %v76_v63 }
  0x32   :  { %v96_v5 = vsel %vm95_vm5, %v90_v2, %v94_v3 }
  0x33   :  { %v98_v6 = vsel %vm97_vm0, %v86_v1, %v96_v5 }
  0x34   :  { %v132_v7 = vsel %vm130_vm6, %v98_v6, %v131_v4 }
  0x35   :  { %133 = vst [vmem:[#allocation5] sm:$0xff] %v132_v7 }
  0x36   :  { %144 = dma.vmem_to_hbm [thread:$0]  %s140_s11, 128, %s142_s14, [#allocation4]  }
  0x37   :  { %219 = dma.done.wait [#allocation4], 128  }
  0x38   :  { %220 = vsyncadd [#allocation4], 4294967168 }
  0x39   :  { %149 = vsyncpa [#allocation3], 1 }
  0x3a   :  { %150 = vsyncpa [#allocation4], 1 }

</bundles_post_ra>
